<compile_context>
chip_gen: v5e
topology: v5e:2x2
jax: 0.10.0
libtpu: 0.0.40
codegen_flags: <defaults>
</compile_context>

<pallas_src>
import functools
import math

import numpy as np

import jax
import jax.numpy as jnp
from jax import lax
from jax.experimental import pallas as pl
from jax.experimental.pallas import tpu as pltpu


# ----------------------------- helpers ---------------------------------------

def _pick_n_tile(n):
    """Lane-dense tile of the flattened spatial axis (multiple of 128 if possible)."""
    if n % 128 != 0:
        return n
    for t in (512, 384, 256, 128):
        if n % t == 0:
            return t
    return n


def _pick_batch_block(batch, c, itemsize=4, budget=8 << 20):
    """How many batch elements per grid step for the sqrtm rebuild."""
    per = max(c * c * itemsize * 3 + c * itemsize, 1)
    bblk = max(1, min(batch, budget // per))
    while batch % bblk != 0:
        bblk -= 1
    return bblk


def _params(dim_sem, need_bytes):
    # Explicit scoped-VMEM limit sized to the tiles (x2 for double buffering),
    # floored at 32 MiB and capped at 64 MiB (v7x physical per-TC VMEM).
    limit = int(min(max(2 * need_bytes + (4 << 20), 32 << 20), 64 << 20))
    return pltpu.CompilerParams(dimension_semantics=dim_sem,
                                vmem_limit_bytes=limit)


# ----------------------------- kernels ---------------------------------------

def _conv_bnstats_kernel(w_ref, x_ref, y_ref, s1_ref, s2_ref):
    # w: (D, C), x: (C, tn) -> y: (D, tn); also accumulate per-batch sum / sumsq.
    yf = jnp.dot(w_ref[...], x_ref[...], preferred_element_type=jnp.float32)
    y_ref[...] = yf.astype(y_ref.dtype)

    @pl.when(pl.program_id(1) == 0)
    def _init():
        s1_ref[...] = jnp.zeros_like(s1_ref)
        s2_ref[...] = jnp.zeros_like(s2_ref)

    s1_ref[...] += jnp.sum(yf, axis=-1, keepdims=True)           # (D, 1)
    s2_ref[...] += jnp.sum(yf * yf, axis=-1, keepdims=True)      # (D, 1)


def _cov_kernel(*refs, n_total, apply_bn_relu):
    # Streams N tiles: cov = (Z Z^T - N m m^T) / (N - 1).
    if apply_bn_relu:
        x_ref, scale_ref, shift_ref, cov_ref, acc_ref, sum_ref = refs
    else:
        x_ref, cov_ref, acc_ref, sum_ref = refs

    nt = pl.program_id(1)

    @pl.when(nt == 0)
    def _init():
        acc_ref[...] = jnp.zeros_like(acc_ref)
        sum_ref[...] = jnp.zeros_like(sum_ref)

    z = x_ref[...]                                               # (C, tn)
    if apply_bn_relu:
        # BatchNorm folded into per-channel scale/shift, then ReLU.
        z = jnp.maximum(z * scale_ref[...] + shift_ref[...], 0.0)
        z = z.astype(x_ref.dtype)

    # Z Z^T without materializing a transpose: contract the lane axis of both.
    acc_ref[...] += lax.dot_general(
        z, z, (((1,), (1,)), ((), ())), preferred_element_type=jnp.float32)
    sum_ref[...] += jnp.sum(z.astype(jnp.float32), axis=-1, keepdims=True)

    @pl.when(nt == pl.num_programs(1) - 1)
    def _finalize():
        m = sum_ref[...] * (1.0 / n_total)                       # (C, 1)
        outer = lax.dot_general(
            m, m, (((1,), (1,)), ((), ())), preferred_element_type=jnp.float32)
        # Guard N == 1 (the torch reference would divide by zero here).
        denom = 1.0 / max(n_total - 1, 1)
        cov_ref[...] = (acc_ref[...] - float(n_total) * outer) * denom


def _sqrtm_kernel(vecs_ref, vals_ref, out_ref):
    # out = V @ diag(sqrt(clamp(lam, 1e-6))) @ V^T, batched over the block.
    lam = jnp.maximum(vals_ref[...], 1e-6)                       # (bblk, 1, C)
    s = jnp.sqrt(lam)
    v = vecs_ref[...]                                            # (bblk, C, C)
    vs = v * s                                                   # scale columns
    out_ref[...] = lax.dot_general(
        vs, v, (((2,), (2,)), ((0,), (0,))), preferred_element_type=jnp.float32)


# ----------------------------- wrappers --------------------------------------

def conv1x1_bnstats(x, w):
    """x: (B, C, N), w: (D, C) -> y (B, D, N), per-batch sum / sumsq (B, D, 1)."""
    B, C, N = x.shape
    D = w.shape[0]
    w = w.astype(x.dtype)
    tn = _pick_n_tile(N)
    isz = jnp.dtype(x.dtype).itemsize
    need = (D * C + C * tn + D * tn) * isz + 2 * D * 4

    return pl.pallas_call(
        _conv_bnstats_kernel,
        out_shape=(jax.ShapeDtypeStruct((B, D, N), x.dtype),
                   jax.ShapeDtypeStruct((B, D, 1), jnp.float32),
                   jax.ShapeDtypeStruct((B, D, 1), jnp.float32)),
        grid=(B, N // tn),
        in_specs=[
            pl.BlockSpec((D, C), lambda b, n: (0, 0)),
            pl.BlockSpec((pl.Squeezed(), C, tn), lambda b, n: (b, 0, n)),
        ],
        out_specs=(
            pl.BlockSpec((pl.Squeezed(), D, tn), lambda b, n: (b, 0, n)),
            pl.BlockSpec((pl.Squeezed(), D, 1), lambda b, n: (b, 0, 0)),
            pl.BlockSpec((pl.Squeezed(), D, 1), lambda b, n: (b, 0, 0)),
        ),
        compiler_params=_params(("parallel", "arbitrary"), need),
    )(w, x)


def cov_pool(x, scale=None, shift=None):
    """x: (B, C, N) -> covariance (B, C, C); optional fused BN(scale,shift)+ReLU."""
    B, C, N = x.shape
    tn = _pick_n_tile(N)
    apply_bn_relu = scale is not None
    kernel = functools.partial(_cov_kernel, n_total=N,
                               apply_bn_relu=apply_bn_relu)

    in_specs = [pl.BlockSpec((pl.Squeezed(), C, tn), lambda b, n: (b, 0, n))]
    args = [x]
    if apply_bn_relu:
        in_specs += [pl.BlockSpec((C, 1), lambda b, n: (0, 0)),
                     pl.BlockSpec((C, 1), lambda b, n: (0, 0))]
        args += [scale.reshape(C, 1).astype(jnp.float32),
                 shift.reshape(C, 1).astype(jnp.float32)]

    isz = jnp.dtype(x.dtype).itemsize
    need = C * tn * isz + 2 * C * C * 4 + 3 * C * 4

    return pl.pallas_call(
        kernel,
        out_shape=jax.ShapeDtypeStruct((B, C, C), jnp.float32),
        grid=(B, N // tn),
        in_specs=in_specs,
        out_specs=pl.BlockSpec((pl.Squeezed(), C, C), lambda b, n: (b, 0, 0)),
        scratch_shapes=[pltpu.VMEM((C, C), jnp.float32),
                        pltpu.VMEM((C, 1), jnp.float32)],
        compiler_params=_params(("parallel", "arbitrary"), need),
    )(*args)


def matrix_sqrt_rebuild(vecs, vals):
    """vecs: (B, C, C), vals: (B, C) -> V diag(sqrt(clamp(lam))) V^T, (B, C, C)."""
    B, C, _ = vecs.shape
    vecs = vecs.astype(jnp.float32)
    vals2 = vals.reshape(B, 1, C).astype(jnp.float32)
    bblk = _pick_batch_block(B, C)
    need = bblk * (2 * C * C * 4 + C * 4)

    return pl.pallas_call(
        _sqrtm_kernel,
        out_shape=jax.ShapeDtypeStruct((B, C, C), jnp.float32),
        grid=(B // bblk,),
        in_specs=[
            pl.BlockSpec((bblk, C, C), lambda b: (b, 0, 0)),
            pl.BlockSpec((bblk, 1, C), lambda b: (b, 0, 0)),
        ],
        out_specs=pl.BlockSpec((bblk, C, C), lambda b: (b, 0, 0)),
        compiler_params=_params(("parallel",), need),
    )(vecs, vals2)


# ----------------------------- module ----------------------------------------

class MpnCovPoolLayerPallas:
    def __init__(self, use_sqrt=True, use_vector=True, input_dim=2048,
                 dimension_reduction=None, key=None):
        self.use_sqrt = use_sqrt
        self.use_vector = use_vector
        self.dimension_reduction = dimension_reduction
        out_dim = dimension_reduction if dimension_reduction is not None else input_dim
        self.output_dim = (out_dim * (out_dim + 1) // 2 if use_vector
                           else out_dim * out_dim)
        self.feat_in = self.output_dim
        if dimension_reduction is not None:
            key = jax.random.PRNGKey(0) if key is None else key
            # kaiming_normal_(mode='fan_out', nonlinearity='relu') for a
            # Conv2d weight of shape (D, C, 1, 1): fan_out = D, std = sqrt(2/D)
            std = math.sqrt(2.0 / dimension_reduction)
            self.conv_w = std * jax.random.normal(
                key, (dimension_reduction, input_dim), jnp.float32)
            # BatchNorm2d: weight=1, bias=0 (per _initialize_weights), eps=1e-5
            self.bn_gamma = jnp.ones((dimension_reduction,), jnp.float32)
            self.bn_beta = jnp.zeros((dimension_reduction,), jnp.float32)
            self.bn_eps = 1e-5

    def __call__(self, x):
        # x: (B, C, H, W) or (B, C, W) — NCHW, matching the PyTorch module.
        if x.ndim == 3:
            x = x[:, :, None, :]            # unsqueeze(2)
        B, C, H, W = x.shape
        N = H * W
        # Keep the caller's dtype (bf16 inputs stay bf16 into the MXU,
        # accumulation is always f32 via preferred_element_type).
        x = x.reshape(B, C, N)

        if self.dimension_reduction is not None:
            # 1x1 conv + fused per-batch BN statistics (one pass over y).
            y, s1, s2 = conv1x1_bnstats(x, self.conv_w)
            D = self.dimension_reduction
            cnt = float(B * N)
            tot1 = s1.reshape(B, D).sum(axis=0)
            tot2 = s2.reshape(B, D).sum(axis=0)
            # BatchNorm2d training-mode batch stats (biased variance).
            mu = tot1 / cnt
            var = jnp.maximum(tot2 / cnt - mu * mu, 0.0)
            scale = self.bn_gamma / jnp.sqrt(var + self.bn_eps)
            shift = self.bn_beta - mu * scale
            out = cov_pool(y, scale, shift)                 # (B, D, D)
        else:
            out = cov_pool(x)                               # (B, C, C)

        if self.use_sqrt:
            # TODO(synk): no Pallas eigh; decomposition in plain JAX,
            # recomposition V diag(sqrt(lam)) V^T in a Pallas kernel.
            vals, vecs = jnp.linalg.eigh(out)
            out = matrix_sqrt_rebuild(vecs, vals)

        if self.use_vector:
            Dd = out.shape[-1]
            # Flat-index take instead of an advanced-indexing gather.
            r, c = np.triu_indices(Dd)
            flat = jnp.asarray((r * Dd + c).astype(np.int32))
            out = jnp.take(out.reshape(out.shape[0], Dd * Dd), flat, axis=1)
        return out


# ----------------------------- reference (pure JAX) ---------------------------

def _reference(layer, x):
    if x.ndim == 3:
        x = x[:, :, None, :]
    B, C, H, W = x.shape
    N = H * W
    xr = x.reshape(B, C, N).astype(jnp.float32)
    if layer.dimension_reduction is not None:
        y = jnp.einsum("dc,bcn->bdn", layer.conv_w, xr)
        mu = jnp.mean(y, axis=(0, 2), keepdims=True)
        var = jnp.var(y, axis=(0, 2), keepdims=True)
        y = (y - mu) / jnp.sqrt(var + layer.bn_eps)
        y = y * layer.bn_gamma.reshape(1, -1, 1) + layer.bn_beta.reshape(1, -1, 1)
        xr = jnp.maximum(y, 0.0)
    mean = jnp.mean(xr, axis=2, keepdims=True)
    xc = xr - mean
    cov = jnp.einsum("bcn,bdn->bcd", xc, xc) / max(N - 1, 1)
    out = cov
    if layer.use_sqrt:
        vals, vecs = jnp.linalg.eigh(cov)
        s = jnp.sqrt(jnp.maximum(vals, 1e-6))
        out = jnp.einsum("bij,bj,bkj->bik", vecs, s, vecs)
    if layer.use_vector:
        Dd = out.shape[-1]
        r, c = np.triu_indices(Dd)
        out = out[:, jnp.asarray(r), jnp.asarray(c)]
    return out


# ----------------------------- main -------------------------------------------

if __name__ == "__main__":
    key = jax.random.PRNGKey(0)
    kx, kw = jax.random.split(key)

    B, C, H, W = 2, 32, 8, 16          # small NCHW input, N = 128 (lane-dense)
    x = jax.random.normal(kx, (B, C, H, W), jnp.float32)

    # Config exercising every branch: 1x1 conv dim-reduction + sqrt + vector.
    layer = MpnCovPoolLayerPallas(use_sqrt=True, use_vector=True,
                                  input_dim=C, dimension_reduction=16, key=kw)
    out = jax.block_until_ready(layer(x))
    assert out.shape == (B, layer.output_dim), out.shape
    ref = jax.block_until_ready(_reference(layer, x))
    assert jnp.allclose(out, ref, atol=5e-2, rtol=5e-2), \
        float(jnp.max(jnp.abs(out - ref)))

    # Default config (no dimension reduction) as well.
    layer2 = MpnCovPoolLayerPallas(use_sqrt=True, use_vector=True, input_dim=C,
                                   dimension_reduction=None)
    out2 = jax.block_until_ready(layer2(x))
    assert out2.shape == (B, layer2.output_dim), out2.shape
    ref2 = jax.block_until_ready(_reference(layer2, x))
    assert jnp.allclose(out2, ref2, atol=5e-2, rtol=5e-2), \
        float(jnp.max(jnp.abs(out2 - ref2)))

    print("KERNEL_OK")
</pallas_src>

<mosaic_0001>
module attributes {stable_mosaic.version = 11 : i64} {
  func.func @_conv_bnstats_kernel(%arg0: i32, %arg1: i32, %arg2: memref<16x32xf32, #tpu.memory_space<vmem>>, %arg3: memref<1x32x128xf32, #tpu.memory_space<vmem>>, %arg4: memref<1x16x128xf32, #tpu.memory_space<vmem>>, %arg5: memref<1x16x1xf32, #tpu.memory_space<vmem>>, %arg6: memref<1x16x1xf32, #tpu.memory_space<vmem>>) attributes {dimension_semantics = [#tpu.dimension_semantics<parallel>, #tpu.dimension_semantics<arbitrary>], iteration_bounds = array<i64: 2, 1>, scalar_prefetch = 0 : i64, scratch_operands = 0 : i64, tpu.core_type = #tpu.core_type<tc>, window_params = [{pipeline_mode = #tpu.pipeline_mode<synchronous>, transform_indices = @transform_0, window_bounds = array<i64: 16, 32>}, {transform_indices = @transform_1, window_bounds = array<i64: 1, 32, 128>}, {transform_indices = @transform_2, window_bounds = array<i64: 1, 16, 128>}, {transform_indices = @transform_3, window_bounds = array<i64: 1, 16, 1>}, {transform_indices = @transform_4, window_bounds = array<i64: 1, 16, 1>}]} {
    %c0 = arith.constant 0 : index
    %c0_0 = arith.constant 0 : index
    %0 = vector.load %arg2[%c0, %c0_0] : memref<16x32xf32, #tpu.memory_space<vmem>>, vector<16x32xf32>
    %c0_1 = arith.constant 0 : index
    %c0_2 = arith.constant 0 : index
    %c0_3 = arith.constant 0 : index
    %1 = vector.load %arg3[%c0_1, %c0_2, %c0_3] : memref<1x32x128xf32, #tpu.memory_space<vmem>>, vector<1x32x128xf32>
    %2 = vector.shape_cast %1 : vector<1x32x128xf32> to vector<32x128xf32>
    %cst = arith.constant dense<0.000000e+00> : vector<16x128xf32>
    %3 = tpu.matmul %0, %2, %cst {dimension_numbers = #tpu.dot_dimension_numbers<[1], [0], [0], [1], [0, 0, 1, 1], [], []>} : vector<16x32xf32>, vector<32x128xf32>, vector<16x128xf32> -> vector<16x128xf32>
    %c0_4 = arith.constant 0 : index
    %c0_5 = arith.constant 0 : index
    %c0_6 = arith.constant 0 : index
    %4 = vector.load %arg4[%c0_4, %c0_5, %c0_6] : memref<1x16x128xf32, #tpu.memory_space<vmem>>, vector<1x16x128xf32>
    %5 = vector.shape_cast %4 : vector<1x16x128xf32> to vector<16x128xf32>
    %6 = vector.shape_cast %3 : vector<16x128xf32> to vector<1x16x128xf32>
    tpu.vector_store %arg4[%c0_4, %c0_5, %c0_6], %6 {strides = array<i32>} : memref<1x16x128xf32, #tpu.memory_space<vmem>>, vector<1x16x128xf32>,
    %c0_i32 = arith.constant 0 : i32
    %7 = arith.cmpi eq, %arg1, %c0_i32 : i32
    %8 = arith.extui %7 : i1 to i32
    %c0_i32_7 = arith.constant 0 : i32
    %9 = arith.cmpi ne, %8, %c0_i32_7 : i32
    scf.if %9 {
      %cst_22 = arith.constant 0.000000e+00 : f32
      %27 = vector.broadcast %cst_22 : f32 to vector<16x1xf32>
      %c0_23 = arith.constant 0 : index
      %c0_24 = arith.constant 0 : index
      %c0_25 = arith.constant 0 : index
      %28 = vector.load %arg5[%c0_23, %c0_24, %c0_25] : memref<1x16x1xf32, #tpu.memory_space<vmem>>, vector<1x16x1xf32>
      %29 = vector.shape_cast %28 : vector<1x16x1xf32> to vector<16x1xf32>
      %30 = vector.shape_cast %27 : vector<16x1xf32> to vector<1x16x1xf32>
      tpu.vector_store %arg5[%c0_23, %c0_24, %c0_25], %30 {strides = array<i32>} : memref<1x16x1xf32, #tpu.memory_space<vmem>>, vector<1x16x1xf32>,
      %cst_26 = arith.constant 0.000000e+00 : f32
      %31 = vector.broadcast %cst_26 : f32 to vector<16x1xf32>
      %c0_27 = arith.constant 0 : index
      %c0_28 = arith.constant 0 : index
      %c0_29 = arith.constant 0 : index
      %32 = vector.load %arg6[%c0_27, %c0_28, %c0_29] : memref<1x16x1xf32, #tpu.memory_space<vmem>>, vector<1x16x1xf32>
      %33 = vector.shape_cast %32 : vector<1x16x1xf32> to vector<16x1xf32>
      %34 = vector.shape_cast %31 : vector<16x1xf32> to vector<1x16x1xf32>
      tpu.vector_store %arg6[%c0_27, %c0_28, %c0_29], %34 {strides = array<i32>} : memref<1x16x1xf32, #tpu.memory_space<vmem>>, vector<1x16x1xf32>,
    } else {
    }
    %c0_8 = arith.constant 0 : index
    %c0_9 = arith.constant 0 : index
    %c0_10 = arith.constant 0 : index
    %10 = vector.load %arg5[%c0_8, %c0_9, %c0_10] : memref<1x16x1xf32, #tpu.memory_space<vmem>>, vector<1x16x1xf32>
    %11 = vector.shape_cast %10 : vector<1x16x1xf32> to vector<16x1xf32>
    %cst_11 = arith.constant dense<0.000000e+00> : vector<16xf32>
    %12 = vector.multi_reduction <add>, %3, %cst_11 [1] : vector<16x128xf32> to vector<16xf32>
    %13 = vector.shape_cast %12 : vector<16xf32> to vector<16x1xf32>
    %14 = arith.addf %11, %13 : vector<16x1xf32>
    %c0_12 = arith.constant 0 : index
    %c0_13 = arith.constant 0 : index
    %c0_14 = arith.constant 0 : index
    %15 = vector.load %arg5[%c0_12, %c0_13, %c0_14] : memref<1x16x1xf32, #tpu.memory_space<vmem>>, vector<1x16x1xf32>
    %16 = vector.shape_cast %15 : vector<1x16x1xf32> to vector<16x1xf32>
    %17 = vector.shape_cast %14 : vector<16x1xf32> to vector<1x16x1xf32>
    tpu.vector_store %arg5[%c0_12, %c0_13, %c0_14], %17 {strides = array<i32>} : memref<1x16x1xf32, #tpu.memory_space<vmem>>, vector<1x16x1xf32>,
    %c0_15 = arith.constant 0 : index
    %c0_16 = arith.constant 0 : index
    %c0_17 = arith.constant 0 : index
    %18 = vector.load %arg6[%c0_15, %c0_16, %c0_17] : memref<1x16x1xf32, #tpu.memory_space<vmem>>, vector<1x16x1xf32>
    %19 = vector.shape_cast %18 : vector<1x16x1xf32> to vector<16x1xf32>
    %20 = arith.mulf %3, %3 : vector<16x128xf32>
    %cst_18 = arith.constant dense<0.000000e+00> : vector<16xf32>
    %21 = vector.multi_reduction <add>, %20, %cst_18 [1] : vector<16x128xf32> to vector<16xf32>
    %22 = vector.shape_cast %21 : vector<16xf32> to vector<16x1xf32>
    %23 = arith.addf %19, %22 : vector<16x1xf32>
    %c0_19 = arith.constant 0 : index
    %c0_20 = arith.constant 0 : index
    %c0_21 = arith.constant 0 : index
    %24 = vector.load %arg6[%c0_19, %c0_20, %c0_21] : memref<1x16x1xf32, #tpu.memory_space<vmem>>, vector<1x16x1xf32>
    %25 = vector.shape_cast %24 : vector<1x16x1xf32> to vector<16x1xf32>
    %26 = vector.shape_cast %23 : vector<16x1xf32> to vector<1x16x1xf32>
    tpu.vector_store %arg6[%c0_19, %c0_20, %c0_21], %26 {strides = array<i32>} : memref<1x16x1xf32, #tpu.memory_space<vmem>>, vector<1x16x1xf32>,
    return
  }
  func.func @transform_0(%arg0: i32, %arg1: i32) -> (i32, i32) {
    %c0_i32 = arith.constant 0 : i32
    %c0_i32_0 = arith.constant 0 : i32
    %c0_i32_1 = arith.constant 0 : i32
    return %c0_i32, %c0_i32_0 : i32, i32
  }
  func.func @transform_1(%arg0: i32, %arg1: i32) -> (i32, i32, i32) {
    %c0_i32 = arith.constant 0 : i32
    %c0_i32_0 = arith.constant 0 : i32
    return %arg0, %c0_i32, %arg1 : i32, i32, i32
  }
  func.func @transform_2(%arg0: i32, %arg1: i32) -> (i32, i32, i32) {
    %c0_i32 = arith.constant 0 : i32
    %c0_i32_0 = arith.constant 0 : i32
    return %arg0, %c0_i32, %arg1 : i32, i32, i32
  }
  func.func @transform_3(%arg0: i32, %arg1: i32) -> (i32, i32, i32) {
    %c0_i32 = arith.constant 0 : i32
    %c0_i32_0 = arith.constant 0 : i32
    %c0_i32_1 = arith.constant 0 : i32
    return %arg0, %c0_i32, %c0_i32_0 : i32, i32, i32
  }
  func.func @transform_4(%arg0: i32, %arg1: i32) -> (i32, i32, i32) {
    %c0_i32 = arith.constant 0 : i32
    %c0_i32_0 = arith.constant 0 : i32
    %c0_i32_1 = arith.constant 0 : i32
    return %arg0, %c0_i32, %c0_i32_0 : i32, i32, i32
  }
}

</mosaic_0001>

<bundles_post_ra>
// kernel: tpu_custom_call.1
= control target key start
LH: loop header
LB: loop body
LE: loop exit
PB: predicated region body
PF: predicated region fallthrough
CT: control target
= control target key end

     0   :  { %s1006_s0 = inlined_call_operand.hbm [shape: f32[16,32], index: 0, kind: input, shape index: {}]   ;;  %s1007_s1 = inlined_call_operand.hbm [shape: f32[2,32,128], index: 1, kind: input, shape index: {}]   ;;  %s1008_s2 = inlined_call_operand.hbm [shape: f32[2,16,128], index: 2, kind: output, shape index: {0}]   ;;  %s1009_s3 = inlined_call_operand.vmem [shape: f32[2,16,1], index: 3, kind: output, shape index: {1}]   ;;  %s1010_s4 = inlined_call_operand.vmem [shape: f32[2,16,1], index: 4, kind: output, shape index: {2}]  }
   0x1   :  { %1014 = sst [smem:[#allocation12_spill]] %s1006_s0 }
   0x2   :  { %10 = vsyncpa [#allocation3], 0 }
   0x3   :  { %11 = vsyncpa [#allocation6], 0 }
   0x4   :  { %13 = vsyncpa [#allocation6 + $0x1], 0 }
   0x5   :  { %14 = vsyncpa [#allocation4], 0 }
   0x6   :  { %16 = vsyncpa [#allocation4 + $0x1], 0  ;;  %s815_s15 = smov 0   ;;  %s817_s16 = smov 0  }
   0x7   :  { %s819_s17 = smov 0   ;;  %s821_s18 = smov 0  }
   0x8   :  { %s823_s19 = smov 0   ;;  %s825_s20 = smov 0  }
   0x9 LB: > { %s527_s21 = sadd.s32 4294967295, %s782_s20   ;;  %s528_s22 = sadd.s32 4294967294, %s782_s20   ;;  %s782_s20 = sphi %s825_s20, %s22_s20   ;;  %s778_s19 = sphi %s823_s19, %s1031_s19   ;;  %s774_s18 = sphi %s821_s18, %s1030_s18   ;;  %s770_s17 = sphi %s819_s17, %s1029_s17   ;;  %s766_s16 = sphi %s817_s16, %s1028_s16   ;;  %s762_s15 = sphi %s815_s15, %s1027_s15  }
   0xa   : > { %p77_p0 = scmp.ne.s32.totalorder %s766_s16, %s762_s15  ;;  %p849_p1 = scmp.eq.s32.totalorder %s527_s21, 0 }
   0xb   : > { %p853_p2 = scmp.eq.s32.totalorder %s527_s21, 1  ;;  %p109_p3 = scmp.eq.s32.totalorder %s528_s22, 1 }
   0xc   : > { %p859_p4 = por %p849_p1, %p77_p0  ;;  %p529_p5 = scmp.ge.s32.totalorder %s782_s20, 1 }
   0xd   : > { %p864_p6 = por %p109_p3, %p77_p0  ;;  %p168_p7 = scmp.lt.s32.totalorder %s782_s20, 3 }
   0xe   : > { %s1019_s0 = sld [smem:[#allocation12_spill]]  ;;  %s784_s5 = smov [#allocation2]  }
   0xf   : > { %p872_p8 = pnand %p529_p5, %p168_p7  ;;  %s181_s6 = sshll.u32 %s784_s5, 4  ;;  %s182_s6 = int_to_ptr.vmem [resolvable:$true] %s181_s6 }
  0x10   : > { %p531_p11 = scmp.ge.s32.totalorder %s782_s20, 2  ;;  %s1011_s7 = smov 128  }
  0x11   : > { %p566_p9 = pneg %p872_p8  ;;  %s1012_s8 = smov 8  }
  0x12   : > { %s34_s9 = sadd.s32 1, %s778_s19  ;;  %s64_s10 = sadd.s32 1, %s770_s17 }
  0x13   : > { %p567_p10 = pnand %p566_p9, %p849_p1  ;;  %p36_p12 = scmp.ge.s32.totalorder %s34_s9, 2 }
  0x14   : > { %s179_s29 = sshll.u32 %s1019_s0, 4  ;;  %p71_p13 = scmp.ne.s32.totalorder %s770_s17, %s766_s16  ;;  %s180_s29 = int_to_ptr.hbm [resolvable:$true] %s179_s29 }
  0x15   : > { %569 = dma.hbm_to_vmem [thread:$0]  (!%p567_p10), %s180_s29, 256, %s182_s6, [#allocation3], %s1011_s7, %s1011_s7, %s1012_s8  }
  0x16   : > { %p72_p0 = scmp.eq.s32.totalorder %s782_s20, 0  ;;  %s1033_s9 = smov (%p36_p12, %s34_s9), 0 }
  0x17   : > { %1021 = sst [smem:[#allocation11_spill]] %s1033_s9  ;;  %p897_p5 = por %p853_p2, %p71_p13 }
  0x18   : > { %p891_p3 = por %p72_p0, %p71_p13  ;;  %s59_s13 = ssub.s32 %s778_s19, %s1033_s9 }
  0x19   : > { %p579_p7 = scmp.lt.s32.totalorder %s782_s20, 2  ;;  %p62_p9 = scmp.eq.s32.totalorder %s59_s13, 0 }
  0x1a   : > { %s195_s14 = sand.u32 1, %s770_s17   ;;  %s550_s27 = sshll.u32 %s778_s19, 5 }
  0x1b   : > { %s532_s21 = sshll.u32 %s195_s14, 5  ;;  %s205_s5 = scalar_lea.hbm %s1007_s1, %s550_s27 }
  0x1c   : > { %s906_s22 = scalar_select %p62_p9, %s770_s17, %s64_s10  }
  0x1d   : > { %s199_s6 = scalar_lea.vmem [#allocation5], %s532_s21  ;;  %s206_s24 = sshll.u32 %s205_s5, 4  ;;  %s207_s24 = int_to_ptr.hbm [resolvable:$true] %s206_s24 }
  0x1e   : > { %s208_s7 = sshll.u32 %s199_s6, 4  ;;  %p571_p2 = pnand %p579_p7, %p891_p3  ;;  %s209_s7 = int_to_ptr.vmem [resolvable:$true] %s208_s7 }
  0x1f   : > { %s196_s8 = scalar_lea.sflag [#allocation6], %s195_s14  ;;  %s1024_s0 = smov 8  }
  0x20   : > { %s1025_s9 = smov 128   ;;  %220 = sbr.rel (%p872_p8) target bundleno = 305 (0x131), region = 28 }
  0x21   : > { %573 = dma.hbm_to_vmem [thread:$0]  (!%p571_p2), %s207_s24, 512, %s209_s7, %s196_s8, %s1025_s9, %s1025_s9, %s1024_s0  }
  0x25   : > { %749 = dma.done.wait (%p849_p1), [#allocation3], 256  }
  0x26   : > { %751 = vsyncadd (%p849_p1), [#allocation3], 4294967040  ;;  %s924_s10 = sand.u32 1, %s766_s16  }
  0x27   : > { %s537_s11 = sshll.u32 %s924_s10, 5  ;;  %s228_s13 = scalar_lea.sflag [#allocation6], %s924_s10 }
  0x28   : > { %s231_s14 = scalar_lea.vmem [#allocation5], %s537_s11 }
  0x29   : > { %753 = dma.done.wait (%p859_p4), %s228_s13, 512  }
  0x2a   : > { %755 = vsyncadd (%p859_p4), %s228_s13, 4294966784  ;;  %v282_v0 = vld [vmem:[%s231_s14 + $0x18] sm:$0xff]  ;;  %v281_v1 = vld [vmem:[%s231_s14 + $0x10] sm:$0xff]  ;;  %vm283_vm0 = vcmask 261120   ;;  %p267_p1 = scmp.lt.s32.totalorder %s774_s18, 1  ;;  %vm319_vm1 = vcmask 7168  }
  0x2b   : > { %302 = vmatpush.msra.mxu0 %v282_v0  ;;  %554 = vmatpush.msra.mxu1 %v282_v0  ;;  %v280_v2 = vld [vmem:[%s231_s14 + $0x8] sm:$0xff]  ;;  %v279_v3 = vld [vmem:[%s231_s14] sm:$0xff]  ;;  %v277_v4 = vld [vmem:[#allocation2] sm:$0xff]  ;;  %v787_v6 = vmov 0.0   ;;  %s538_s27 = sshll.u32 %s924_s10, 4  ;;  %s553_s5 = sshll.u32 %s774_s18, 4 }
  0x2c   : > { %v278_v5 = vld [vmem:[#allocation2 + $0x8] sm:$0xff]  ;;  %s268_s0 = scalar_select %p267_p1, %s774_s18, 1 }
  0x2d   : > { %303 = vmatpush.msra.mxu0 %v281_v1  ;;  %555 = vmatpush.msra.mxu1 %v281_v1  ;;  %s252_s28 = scalar_lea.vmem [#allocation7], %s538_s27  ;;  %s370_s11 = scalar_lea.hbm %s1008_s2, %s553_s5 }
  0x2e   : > { %s551_s23 = sshll.u32 %s268_s0, 4  ;;  %s371_s29 = sshll.u32 %s252_s28, 4  ;;  %s957_s29 = int_to_ptr.vmem [resolvable:$true] %s371_s29 }
  0x2f   : > { %304 = vmatpush.msra.mxu0 %v280_v2  ;;  %556 = vmatpush.msra.mxu1 %v280_v2  ;;  %s937_s7 = scalar_lea.vmem %s1009_s3, %s551_s23  ;;  %s946_s21 = scalar_lea.vmem %s1010_s4, %s551_s23 }
  0x30   : > { %320 = vst.msk [vmem:[%s937_s7] sm:$0xff] %vm319_vm1, %v787_v6  ;;  %s373_s13 = sshll.u32 %s370_s11, 4  ;;  %s348_s14 = scalar_lea.sflag [#allocation4], %s924_s10  ;;  %s374_s13 = int_to_ptr.hbm [resolvable:$true] %s373_s13 }
  0x31   : > { %305 = vmatpush.msra.mxu0 %v279_v3  ;;  %557 = vmatpush.msra.mxu1 %v279_v3  ;;  %321 = vst.msk [vmem:[%s937_s7 + $0x8] sm:$0xff] %vm319_vm1, %v787_v6  ;;  %s710_s0 = sshra.s32 %s374_s13, 4  ;;  %s716_s30 = scalar_lea.hbm %s1008_s2, 32  ;;  %s711_s0 = int_to_ptr.hbm [resolvable:$true] %s710_s0 }
  0x32   : > { %543 = vmatmul.msk.f32.vlgmr.msra.gmra.mxu0 %vm283_vm0, %v277_v4  ;;  %544 = vmatmul.msk.f32.vlgmr.msra.gmra.mxu1 %vm283_vm0, %v278_v5  ;;  %322 = vst.msk [vmem:[%s946_s21] sm:$0xff] %vm319_vm1, %v787_v6  ;;  %s712_s18 = scalar_lea.hbm %s711_s0, 16  ;;  %p717_p12 = scmp.lt.s32.totalorder %s711_s0, %s1008_s2 }
  0x33   : > { %323 = vst.msk [vmem:[%s946_s21 + $0x8] sm:$0xff] %vm319_vm1, %v787_v6  ;;  %p713_p4 = scmp.ne.s32.totalorder %s711_s0, %s712_s18  ;;  %p718_p13 = scmp.lt.s32.totalorder %s716_s30, %s712_s18 }
  0x35   : > { %p714_p8 = pnand %p713_p4, %p897_p5  ;;  %p719_p0 = por %p718_p13, %p717_p12 }
  0x37   : > { %p715_p10 = pneg %p714_p8 }
  0x39   : > { %p720_p3 = pnand %p719_p0, %p715_p10 }
  0xaf   : > { %v307_v7 = vpop.f32.mrf.mxu0  ;;  %v310_v8 = vpop.f32.mrf.mxu1 }
  0xb0   : > { %313 = vst [vmem:[%s252_s28] sm:$0xff] %v307_v7  ;;  %326 = vadd.xlane.f32.xlu0 %v307_v7  ;;  %v337_v9 = vmul.f32 %v307_v7, %v307_v7 }
  0xb1   : > { %314 = vst [vmem:[%s252_s28 + $0x8] sm:$0xff] %v310_v8 }
  0xb2   : > { %339 = vadd.xlane.f32.xlu1 %v337_v9 }
  0xb3   : > { %723 = shalt.err (!%p720_p3)
}
  0xb4   : > { %s788_s10 = smov 128   ;;  %s789_s27 = smov 8   ;;  %v338_v10 = vmul.f32 %v310_v8, %v310_v8  ;;  %v324_v11 = vld [vmem:[%s937_s7] sm:$0xff]  ;;  %v325_v17 = vld [vmem:[%s937_s7 + $0x8] sm:$0xff] }
  0xb5   : > { %564 = dma.vmem_to_hbm [thread:$0]  (%p897_p5), %s957_s29, 256, %s374_s13, %s348_s14, %s788_s10, %s788_s10, %s789_s27  }
  0xb6   : > { %v335_v13 = vld [vmem:[%s946_s21] sm:$0xff]  ;;  %v336_v19 = vld [vmem:[%s946_s21 + $0x8] sm:$0xff] }
  0xb8   : > { %328 = vadd.xlane.f32.xlu0 %v310_v8 }
  0xba   : > { %341 = vadd.xlane.f32.xlu1 %v338_v10 }
 0x123   : > { %v327_v12 = vpop.xlane.xlu0 %326 }
 0x124   : > { %v330_v14 = vadd.f32 %v327_v12, %v324_v11 }
 0x125   : > { %v340_v15 = vpop.xlane.xlu1 %339 }
 0x126   : > { %333 = vst.msk [vmem:[%s937_s7] sm:$0xff] %vm319_vm1, %v330_v14  ;;  %v343_v16 = vadd.f32 %v340_v15, %v335_v13 }
 0x128   : > { %345 = vst.msk [vmem:[%s946_s21] sm:$0xff] %vm319_vm1, %v343_v16 }
 0x12b   : > { %v329_v18 = vpop.xlane.xlu0 %328 }
 0x12c   : > { %v331_v20 = vadd.f32 %v329_v18, %v325_v17 }
 0x12d   : > { %v342_v21 = vpop.xlane.xlu1 %341 }
 0x12e   : > { %334 = vst.msk [vmem:[%s937_s7 + $0x8] sm:$0xff] %vm319_vm1, %v331_v20  ;;  %v344_v22 = vadd.f32 %v342_v21, %v336_v19 }
 0x130   : > { %346 = vst.msk [vmem:[%s946_s21 + $0x8] sm:$0xff] %vm319_vm1, %v344_v22 }
 0x131 PF: > { %s394_s12 = sand.u32 1, %s762_s15   ;;  %p575_p5 = pnand %p531_p11, %p864_p6 }
 0x132   : > { %s395_s28 = scalar_lea.sflag [#allocation4], %s394_s12 }
 0x133   : > { %p576_p7 = pneg %p575_p5 }
 0x135   : > { %757 = dma.done.wait (%p576_p7), %s395_s28, 256  }
 0x136   : > { %759 = vsyncadd (%p576_p7), %s395_s28, 4294967040  ;;  %s22_s20 = sadd.s32 1, %s782_s20   ;;  %s1026_s7 = sld [smem:[#allocation11_spill]] }
 0x137   : > { %p19_p9 = scmp.ge.s32.totalorder %s22_s20, 4   ;;  %s1027_s15 = smov %s766_s16 }
 0x138   : > { %s1028_s16 = smov %s770_s17  ;;  %s1029_s17 = smov %s906_s22 }
 0x139   : > { %s1030_s18 = smov %s778_s19  ;;  %21 = sbr.rel (!%p19_p9) target bundleno = 9 (0x9), region = 106 }
 0x13c   : > { %s1031_s19 = smov %s1026_s7 }
 0x13e   :  { %417 = vsyncpa [#allocation3], 1 }
 0x13f   :  { %419 = vsyncpa [#allocation3 + $0x1], 1 }
 0x140   :  { %420 = vsyncpa [#allocation6], 1 }
 0x141   :  { %422 = vsyncpa [#allocation6 + $0x1], 1 }
 0x142   :  { %423 = vsyncpa [#allocation4], 1 }
 0x143   :  { %425 = vsyncpa [#allocation4 + $0x1], 1 }

</bundles_post_ra>
